<compile_context>
chip_gen: v6e
topology: v6e:2x2x1
jax: 0.10.0
libtpu: 0.0.40
codegen_flags: <defaults>
</compile_context>

<pallas_src>
import functools

import jax
import jax.numpy as jnp
from jax.experimental import pallas as pl
from jax.experimental.pallas import tpu as pltpu


def _ocsoftmax_kernel(w_ref, x_ref, lab_ref, loss_ref, scores_ref,
                      *, r_real, r_fake, alpha, batch):
    eps = 1e-12
    i = pl.program_id(0)

    x = x_ref[...].astype(jnp.float32)      # (TB, D)  widened in-register
    w = w_ref[...].astype(jnp.float32)      # (1, D)   already unit-norm
    lab = lab_ref[...]                      # (TB, 1)  int32

    # Fused L2 normalization: scores = (x . w) / max(||x||_2, eps)
    dot = jnp.sum(x * w, axis=1, keepdims=True)        # (TB, 1)
    sq = jnp.sum(x * x, axis=1, keepdims=True)         # (TB, 1)
    scores = dot / jnp.maximum(jnp.sqrt(sq), eps)      # (TB, 1)

    # output_scores = scores.clone()
    scores_ref[...] = scores.astype(scores_ref.dtype)

    # scores[labels == 0] = r_real - scores ; scores[labels == 1] -= r_fake
    adj = jnp.where(lab == 0, r_real - scores,
                    jnp.where(lab == 1, scores - r_fake, scores))

    # softplus(alpha * scores); mask out padded rows of the last tile.
    sp = jax.nn.softplus(alpha * adj)                  # (TB, 1)
    tb = sp.shape[0]
    row = i * tb + jax.lax.broadcasted_iota(jnp.int32, (tb, 1), 0)
    sp = jnp.where(row < batch, sp, 0.0)

    # Per-tile partial sum; wrapper divides by the true batch size.
    loss_ref[...] = jnp.sum(sp, axis=0, keepdims=True).astype(loss_ref.dtype)


def _round_up(n, m):
    return ((n + m - 1) // m) * m


def _choose_block_batch(batch, feat_dim, itemsize,
                        target_bytes=4 * 1024 * 1024, max_tb=32768):
    """Batch tile sized so (TB * D * itemsize) * 2 buffers stays a few MiB."""
    tb = target_bytes // max(feat_dim * itemsize, 1)
    tb = max(8, min((tb // 8) * 8, max_tb))
    return min(tb, _round_up(batch, 8))


def ocsoftmax_forward(x, labels, center,
                      r_real=0.9, r_fake=0.5, alpha=20.0,
                      block_batch=None):
    """Pallas implementation of OCSoftmax.forward.

    Args:
        x:      (batch, feat_dim) features (f32 or bf16).
        labels: (batch,) int labels (0 = real, 1 = fake).
        center: (1, feat_dim) parameter.
        block_batch: optional batch tile size override (multiple of 8).
    Returns:
        (loss: scalar f32, output_scores: (batch,) f32)
    """
    B, D = x.shape
    eps = 1e-12

    # Unit-normalize the (1, D) center once here (F.normalize semantics);
    # tiny op hoisted out of the per-tile hot loop.
    c = center.astype(jnp.float32)
    w = c / jnp.maximum(jnp.sqrt(jnp.sum(c * c, axis=1, keepdims=True)), eps)

    if block_batch is None:
        tb = _choose_block_batch(B, D, jnp.dtype(x.dtype).itemsize)
    else:
        tb = max(8, (int(block_batch) // 8) * 8)

    num_tiles = pl.cdiv(B, tb)
    b_pad = num_tiles * tb

    labels2d = labels.reshape(B, 1).astype(jnp.int32)
    if b_pad != B:
        x_in = jnp.pad(x, ((0, b_pad - B), (0, 0)))
        lab_in = jnp.pad(labels2d, ((0, b_pad - B), (0, 0)))
    else:
        x_in = x
        lab_in = labels2d

    kernel = functools.partial(_ocsoftmax_kernel,
                               r_real=float(r_real),
                               r_fake=float(r_fake),
                               alpha=float(alpha),
                               batch=B)

    loss_parts, scores = pl.pallas_call(
        kernel,
        grid=(num_tiles,),
        out_shape=(
            jax.ShapeDtypeStruct((num_tiles, 1), jnp.float32),  # loss partials
            jax.ShapeDtypeStruct((b_pad, 1), jnp.float32),      # raw cosine scores
        ),
        in_specs=[
            pl.BlockSpec((1, D), lambda i: (0, 0)),     # w (resident, tiny)
            pl.BlockSpec((tb, D), lambda i: (i, 0)),    # x tile
            pl.BlockSpec((tb, 1), lambda i: (i, 0)),    # labels tile
        ],
        out_specs=(
            pl.BlockSpec((1, 1), lambda i: (i, 0)),     # per-tile loss partial
            pl.BlockSpec((tb, 1), lambda i: (i, 0)),    # scores tile
        ),
        compiler_params=pltpu.CompilerParams(
            dimension_semantics=("parallel",),
            vmem_limit_bytes=32 * 1024 * 1024,
        ),
    )(w, x_in, lab_in)

    loss = jnp.sum(loss_parts) / B
    return loss, scores[:B, 0]


def _reference(x, labels, center, r_real=0.9, r_fake=0.5, alpha=20.0):
    eps = 1e-12
    w = center / jnp.maximum(
        jnp.linalg.norm(center, axis=1, keepdims=True), eps)
    xn = x / jnp.maximum(jnp.linalg.norm(x, axis=1, keepdims=True), eps)
    scores = xn @ w.T                      # (B, 1)
    out_scores = scores[:, 0]
    lab = labels.reshape(-1, 1)
    adj = jnp.where(lab == 0, r_real - scores,
                    jnp.where(lab == 1, scores - r_fake, scores))
    loss = jnp.mean(jax.nn.softplus(alpha * adj))
    return loss, out_scores


if __name__ == "__main__":
    key = jax.random.PRNGKey(0)
    k_x, k_c, k_l = jax.random.split(key, 3)

    batch, feat_dim = 8, 2

    x = jax.random.normal(k_x, (batch, feat_dim), dtype=jnp.float32)
    labels = jax.random.bernoulli(k_l, 0.5, (batch,)).astype(jnp.int32)
    # Deterministic stand-in for nn.init.kaiming_uniform_(torch.randn(1, feat_dim))
    center = jax.random.normal(k_c, (1, feat_dim), dtype=jnp.float32)

    loss, scores = ocsoftmax_forward(x, labels, center)
    jax.block_until_ready((loss, scores))

    ref_loss, ref_scores = _reference(x, labels, center)
    assert jnp.allclose(loss, ref_loss, atol=1e-5, rtol=1e-5), (loss, ref_loss)
    assert jnp.allclose(scores, ref_scores, atol=1e-5, rtol=1e-5)

    # Second check: multi-tile grid + padded (masked) last tile.
    batch2 = 20
    x2 = jax.random.normal(jax.random.PRNGKey(1), (batch2, feat_dim),
                           dtype=jnp.float32)
    labels2 = jax.random.bernoulli(jax.random.PRNGKey(2), 0.5,
                                   (batch2,)).astype(jnp.int32)
    loss2, scores2 = ocsoftmax_forward(x2, labels2, center, block_batch=8)
    jax.block_until_ready((loss2, scores2))
    ref_loss2, ref_scores2 = _reference(x2, labels2, center)
    assert jnp.allclose(loss2, ref_loss2, atol=1e-5, rtol=1e-5), (loss2, ref_loss2)
    assert jnp.allclose(scores2, ref_scores2, atol=1e-5, rtol=1e-5)

    print("KERNEL_OK")
</pallas_src>

<mosaic_0001>
module attributes {stable_mosaic.version = 11 : i64} {
  func.func @_ocsoftmax_kernel(%arg0: i32, %arg1: memref<1x2xf32, #tpu.memory_space<vmem>>, %arg2: memref<8x2xf32, #tpu.memory_space<vmem>>, %arg3: memref<8x1xi32, #tpu.memory_space<vmem>>, %arg4: memref<1x1xf32, #tpu.memory_space<vmem>>, %arg5: memref<8x1xf32, #tpu.memory_space<vmem>>) attributes {dimension_semantics = [#tpu.dimension_semantics<parallel>], iteration_bounds = array<i64: 1>, scalar_prefetch = 0 : i64, scratch_operands = 0 : i64, tpu.core_type = #tpu.core_type<tc>, window_params = [{pipeline_mode = #tpu.pipeline_mode<synchronous>, transform_indices = @transform_0, window_bounds = array<i64: 1, 2>}, {transform_indices = @transform_1, window_bounds = array<i64: 8, 2>}, {transform_indices = @transform_2, window_bounds = array<i64: 8, 1>}, {transform_indices = @transform_3, window_bounds = array<i64: 1, 1>}, {transform_indices = @transform_4, window_bounds = array<i64: 8, 1>}]} {
    %c0 = arith.constant 0 : index
    %c0_0 = arith.constant 0 : index
    %0 = vector.load %arg2[%c0, %c0_0] : memref<8x2xf32, #tpu.memory_space<vmem>>, vector<8x2xf32>
    %c0_1 = arith.constant 0 : index
    %c0_2 = arith.constant 0 : index
    %1 = vector.load %arg1[%c0_1, %c0_2] : memref<1x2xf32, #tpu.memory_space<vmem>>, vector<1x2xf32>
    %c0_3 = arith.constant 0 : index
    %c0_4 = arith.constant 0 : index
    %2 = vector.load %arg3[%c0_3, %c0_4] : memref<8x1xi32, #tpu.memory_space<vmem>>, vector<8x1xi32>
    %3 = vector.broadcast %1 : vector<1x2xf32> to vector<8x2xf32>
    %4 = arith.mulf %0, %3 : vector<8x2xf32>
    %cst = arith.constant dense<0.000000e+00> : vector<8xf32>
    %5 = vector.multi_reduction <add>, %4, %cst [1] : vector<8x2xf32> to vector<8xf32>
    %6 = vector.shape_cast %5 : vector<8xf32> to vector<8x1xf32>
    %7 = arith.mulf %0, %0 : vector<8x2xf32>
    %cst_5 = arith.constant dense<0.000000e+00> : vector<8xf32>
    %8 = vector.multi_reduction <add>, %7, %cst_5 [1] : vector<8x2xf32> to vector<8xf32>
    %9 = vector.shape_cast %8 : vector<8xf32> to vector<8x1xf32>
    %10 = math.sqrt %9 : vector<8x1xf32>
    %cst_6 = arith.constant 9.99999996E-13 : f32
    %11 = vector.broadcast %cst_6 : f32 to vector<8x1xf32>
    %12 = arith.maximumf %10, %11 : vector<8x1xf32>
    %13 = arith.divf %6, %12 : vector<8x1xf32>
    %c0_7 = arith.constant 0 : index
    %c0_8 = arith.constant 0 : index
    %14 = vector.load %arg5[%c0_7, %c0_8] : memref<8x1xf32, #tpu.memory_space<vmem>>, vector<8x1xf32>
    tpu.vector_store %arg5[%c0_7, %c0_8], %13 {strides = array<i32>} : memref<8x1xf32, #tpu.memory_space<vmem>>, vector<8x1xf32>,
    %c0_i32 = arith.constant 0 : i32
    %15 = vector.broadcast %c0_i32 : i32 to vector<8x1xi32>
    %16 = arith.cmpi eq, %2, %15 : vector<8x1xi32>
    %cst_9 = arith.constant 0.899999976 : f32
    %17 = vector.broadcast %cst_9 : f32 to vector<8x1xf32>
    %18 = arith.subf %17, %13 : vector<8x1xf32>
    %c1_i32 = arith.constant 1 : i32
    %19 = vector.broadcast %c1_i32 : i32 to vector<8x1xi32>
    %20 = arith.cmpi eq, %2, %19 : vector<8x1xi32>
    %cst_10 = arith.constant 5.000000e-01 : f32
    %21 = vector.broadcast %cst_10 : f32 to vector<8x1xf32>
    %22 = arith.subf %13, %21 : vector<8x1xf32>
    %23 = arith.select %20, %22, %13 : vector<8x1xi1>, vector<8x1xf32>
    %24 = arith.select %16, %18, %23 : vector<8x1xi1>, vector<8x1xf32>
    %cst_11 = arith.constant 2.000000e+01 : f32
    %25 = vector.broadcast %cst_11 : f32 to vector<8x1xf32>
    %26 = arith.mulf %25, %24 : vector<8x1xf32>
    %cst_12 = arith.constant 0.000000e+00 : f32
    %27 = vector.broadcast %cst_12 : f32 to vector<8x1xf32>
    %28 = arith.maximumf %26, %27 : vector<8x1xf32>
    %29 = vector.broadcast %cst_12 : f32 to vector<8x1xf32>
    %30 = arith.subf %26, %29 : vector<8x1xf32>
    %31 = arith.cmpf one, %30, %30 : vector<8x1xf32>
    %32 = vector.broadcast %cst_12 : f32 to vector<8x1xf32>
    %33 = arith.addf %26, %32 : vector<8x1xf32>
    %34 = math.absf %30 : vector<8x1xf32>
    %cst_13 = arith.constant 0.000000e+00 : f32
    %35 = vector.broadcast %cst_13 : f32 to vector<8x1xf32>
    %36 = arith.subf %35, %34 : vector<8x1xf32>
    %37 = math.exp %36 : vector<8x1xf32>
    %38 = math.log1p %37 : vector<8x1xf32>
    %39 = arith.addf %28, %38 : vector<8x1xf32>
    %40 = arith.select %31, %33, %39 : vector<8x1xi1>, vector<8x1xf32>
    %c8_i32 = arith.constant 8 : i32
    %41 = arith.muli %arg0, %c8_i32 : i32
    %42 = tpu.iota {dimensions = array<i32: 0>} : vector<8x1xi32>
    %43 = vector.broadcast %41 : i32 to vector<8x1xi32>
    %44 = arith.addi %43, %42 : vector<8x1xi32>
    %c8_i32_14 = arith.constant 8 : i32
    %45 = vector.broadcast %c8_i32_14 : i32 to vector<8x1xi32>
    %46 = arith.cmpi slt, %44, %45 : vector<8x1xi32>
    %cst_15 = arith.constant 0.000000e+00 : f32
    %47 = vector.broadcast %cst_15 : f32 to vector<8x1xf32>
    %48 = arith.select %46, %40, %47 : vector<8x1xi1>, vector<8x1xf32>
    %cst_16 = arith.constant dense<0.000000e+00> : vector<1xf32>
    %49 = vector.multi_reduction <add>, %48, %cst_16 [0] : vector<8x1xf32> to vector<1xf32>
    %50 = vector.shape_cast %49 : vector<1xf32> to vector<1x1xf32>
    %c0_17 = arith.constant 0 : index
    %c0_18 = arith.constant 0 : index
    %51 = vector.load %arg4[%c0_17, %c0_18] : memref<1x1xf32, #tpu.memory_space<vmem>>, vector<1x1xf32>
    tpu.vector_store %arg4[%c0_17, %c0_18], %50 {strides = array<i32>} : memref<1x1xf32, #tpu.memory_space<vmem>>, vector<1x1xf32>,
    return
  }
  func.func @transform_0(%arg0: i32) -> (i32, i32) {
    %c0_i32 = arith.constant 0 : i32
    %c0_i32_0 = arith.constant 0 : i32
    %c0_i32_1 = arith.constant 0 : i32
    return %c0_i32, %c0_i32_0 : i32, i32
  }
  func.func @transform_1(%arg0: i32) -> (i32, i32) {
    %c0_i32 = arith.constant 0 : i32
    %c0_i32_0 = arith.constant 0 : i32
    return %arg0, %c0_i32 : i32, i32
  }
  func.func @transform_2(%arg0: i32) -> (i32, i32) {
    %c0_i32 = arith.constant 0 : i32
    %c0_i32_0 = arith.constant 0 : i32
    return %arg0, %c0_i32 : i32, i32
  }
  func.func @transform_3(%arg0: i32) -> (i32, i32) {
    %c0_i32 = arith.constant 0 : i32
    %c0_i32_0 = arith.constant 0 : i32
    return %arg0, %c0_i32 : i32, i32
  }
  func.func @transform_4(%arg0: i32) -> (i32, i32) {
    %c0_i32 = arith.constant 0 : i32
    %c0_i32_0 = arith.constant 0 : i32
    return %arg0, %c0_i32 : i32, i32
  }
}

</mosaic_0001>

<bundles_post_ra>
// kernel: tpu_custom_call.1
= control target key start
LH: loop header
LB: loop body
LE: loop exit
PB: predicated region body
PF: predicated region fallthrough
CT: control target
= control target key end

     0   :  { %vm27_vm0 = vcmask 15360   ;;  %s182_s0 = inlined_call_operand.vmem [shape: f32[1,2], index: 0, kind: input, shape index: {}]   ;;  %s183_s1 = inlined_call_operand.vmem [shape: f32[8,2], index: 1, kind: input, shape index: {}]   ;;  %s184_s2 = inlined_call_operand.vmem [shape: s32[8,1], index: 2, kind: input, shape index: {}]   ;;  %s185_s3 = inlined_call_operand.hbm [shape: f32[1,1], index: 3, kind: output, shape index: {0}]   ;;  %s186_s4 = inlined_call_operand.vmem [shape: f32[8,1], index: 4, kind: output, shape index: {1}]  }
   0x1   :  { %v17_v0 = vld [vmem:[%s183_s1] sm:$0xff] }
   0x2   :  { %v106_v1 = vld [vmem:[%s182_s0] ss:$0 sm:$0xff] }
   0x3   :  { %10 = vsyncpa [#allocation3], 0  ;;  %v31_v2 = vmul.f32 %v17_v0, %v17_v0  ;;  %v26_v3 = vmul.f32 %v106_v1, %v17_v0  ;;  %v19_v14 = vld [vmem:[%s184_s2] sm:$0xff]  ;;  %vm45_vm3 = vcmask 7168   ;;  %s139_s2 = smov [#allocation2]   ;;  %vm86_vm8 = vcmask 0  }
   0x4   :  { %vm49_vm4 = vcmp.eq.s32.totalorder %v19_v14, 1  ;;  %vm47_vm5 = vcmp.eq.s32.totalorder %v19_v14, 0 }
   0x5   :  { %v32_v4 = vsel %vm27_vm0, %v31_v2, 0.0  ;;  %v28_v5 = vsel %vm27_vm0, %v26_v3, 0.0 }
   0x6   :  { %33 = vadd.xlane.f32.xlu0 %v32_v4 }
   0xa   :  { %29 = vadd.xlane.f32.xlu0 %v28_v5 }
  0x8f   :  { %v34_v6 = vpop.xlane.xlu0 %33 }
  0x90   :  { %109 = vrsqrt.f32 %v34_v6  ;;  %vm37_vm1 = vcmp.eq.f32.partialorder %v34_v6, inf  ;;  %v40_v9 = vand.u32 2147483648, %v34_v6  ;;  %vm39_vm2 = vcmp.eq.f32.partialorder %v34_v6, 0.0 }
  0x93   :  { %v30_v13 = vpop.xlane.xlu0 %29 }
  0x9d   :  { %v110_v7 = vpop.eup %109 }
  0x9e   :  { %v36_v8 = vmul.f32 %v110_v7, %v34_v6 }
  0xa0   :  { %v38_v10 = vsel %vm37_vm1, %v34_v6, %v36_v8 }
  0xa1   :  { %v41_v11 = vsel %vm39_vm2, %v40_v9, %v38_v10 }
  0xa2   :  { %v42_v12 = vmax.f32 %v41_v11, 1e-12 }
  0xa4   :  { %111 = vrcp.f32 %v42_v12 }
  0xb1   :  { %v112_v15 = vpop.eup %111 }
  0xb2   :  { %v44_v16 = vmul.f32 %v112_v15, %v30_v13 }
  0xb4   :  { %46 = vst.msk [vmem:[%s186_s4] sm:$0xff] %vm45_vm3, %v44_v16  ;;  %v48_v17 = vsub.f32 0.9, %v44_v16  ;;  %v107_v18 = vadd.f32 -0.5, %v44_v16  ;;  %s94_s4 = sshll.u32 %s139_s2, 4  ;;  %s95_s4 = int_to_ptr.vmem [resolvable:$true] %s94_s4 }
  0xb5   :  { %s117_s21 = scalar_lea.vmem %s95_s4, 16  ;;  %s121_s22 = scalar_lea.vmem %s95_s4, 32 }
  0xb6   :  { %v51_v19 = vsel %vm49_vm4, %v107_v18, %v44_v16  ;;  %p118_p0 = scmp.ne.s32.totalorder %s95_s4, %s117_s21  ;;  %p122_p1 = scmp.lt.s32.totalorder %s95_s4, %s95_s4 }
  0xb7   :  { %v52_v20 = vsel %vm47_vm5, %v48_v17, %v51_v19  ;;  %p123_p2 = scmp.lt.s32.totalorder %s121_s22, %s117_s21 }
  0xb8   :  { %v53_v21 = vmul.f32 20.0, %v52_v20 }
  0xb9   :  { %p124_p3 = por %p123_p2, %p122_p1 }
  0xba   :  { %v57_v22 = vand.u32 2147483647, %v53_v21  ;;  %v54_v33 = vmax.f32 %v53_v21, 0.0  ;;  %vm55_vm7 = vcmp.ne.f32.partialorder %v53_v21, %v53_v21 }
  0xbb   :  { %p125_p4 = pnand %p124_p3, %p118_p0 }
  0xbc   :  { %v58_v23 = vsub.f32 0.0, %v57_v22 }
  0xbe   :  { %v59_v24 = vmul.f32 1.442695, %v58_v23 }
  0xc0   :  { %113 = vpow2.f32 %v59_v24 }
  0xcd   :  { %v114_v25 = vpop.eup %113 }
  0xce   :  { %v61_v26 = vadd.f32 1.0, %v114_v25  ;;  %v64_v27 = vmul.f32 -0.5, %v114_v25  ;;  %v67_v29 = vand.u32 2147483647, %v114_v25 }
  0xd0   :  { %115 = vlog2.f32 %v61_v26  ;;  %v65_v28 = vadd.f32 1.0, %v64_v27  ;;  %vm68_vm6 = vcmp.lt.f32.partialorder %v67_v29, 0.0004427343 }
  0xd2   :  { %v66_v32 = vmul.f32 %v114_v25, %v65_v28 }
  0xdd   :  { %v116_v30 = vpop.eup %115 }
  0xde   :  { %v63_v31 = vmul.f32 0.6931472, %v116_v30 }
  0xe0   :  { %v69_v34 = vsel %vm68_vm6, %v66_v32, %v63_v31 }
  0xe1   :  { %v70_v35 = vadd.f32 %v69_v34, %v54_v33 }
  0xe3   :  { %v71_v36 = vsel %vm55_vm7, %v53_v21, %v70_v35 }
  0xe4   :  { %v79_v37 = vsel %vm45_vm3, %v71_v36, 0.0 }
  0xe5   :  { %v80_v38 = vrot.slane %v79_v37, 4 }
  0xe7   :  { %v81_v39 = vadd.f32 %v80_v38, %v79_v37 }
  0xe9   :  { %v82_v40 = vrot.slane %v81_v39, 2 }
  0xeb   :  { %v83_v41 = vadd.f32 %v82_v40, %v81_v39 }
  0xed   :  { %v84_v42 = vrot.slane %v83_v41, 1 }
  0xef   :  { %v85_v43 = vadd.f32 %v84_v42, %v83_v41 }
  0xf1   :  { %87 = vst.msk [vmem:[#allocation2] sm:$0x1] %vm86_vm8, %v85_v43 }
  0xf2   :  { %128 = shalt.err (!%p125_p4)
}
  0xf3   :  { %97 = dma.vmem_to_hbm [thread:$0]  %s95_s4, 16, %s185_s3, [#allocation3]  }
  0xf4   :  { %137 = dma.done.wait [#allocation3], 16  }
  0xf5   :  { %138 = vsyncadd [#allocation3], 4294967280 }
  0xf6   :  { %105 = vsyncpa [#allocation3], 1 }

</bundles_post_ra>
